<compile_context>
chip_gen: v7x
topology: tpu7x:2x2x1
jax: 0.10.0
libtpu: 0.0.40
codegen_flags: <defaults>
</compile_context>

<pallas_src>
import math

import jax
import jax.numpy as jnp
from jax import lax
from jax.experimental import pallas as pl
from jax.experimental.pallas import tpu as pltpu

NEG_SLOPE = 0.01  # nn.LeakyReLU() default negative_slope


def _vmem_limit_bytes():
    try:
        cap = int(pltpu.get_tpu_info().vmem_capacity_bytes)
        return min(cap // 2, 96 * 1024 * 1024)
    except Exception:  # pragma: no cover - conservative fallback
        return 32 * 1024 * 1024


# ----------------------------------------------------------------------------
# W-banded weight construction (wrapper-side, traced once).
#   big[kd*3+kh, wi*cin+ci, wo*cout+co] = w[co, ci, kd, kh, wi-wo]
#     for wi - wo in {0, 1, 2}, else 0          (wi in [0, W+2), wo in [0, W))
# so a single matmul against a padded channels-last row (lane = wi*cin+ci)
# performs the conv's kw reduction with spatial W on the output lane side.
# ----------------------------------------------------------------------------
def _banded_weights(w, W):
    cout, cin = int(w.shape[0]), int(w.shape[1])
    Wp = W + 2
    wo = jnp.arange(W)
    mats = []
    for kd in range(3):
        for kh in range(3):
            big = jnp.zeros((Wp, W, cin, cout), jnp.float32)
            for kw in range(3):
                sub = jnp.transpose(w[:, :, kd, kh, kw], (1, 0))  # (cin, cout)
                big = big.at[wo + kw, wo, :, :].set(
                    jnp.broadcast_to(sub, (W, cin, cout)))
            big = jnp.transpose(big, (0, 2, 1, 3))                # (Wp,cin,W,cout)
            mats.append(big.reshape(Wp * cin, W * cout))
    return jnp.stack(mats, axis=0).astype(jnp.bfloat16)           # (9, Wp*cin, W*cout)


# ----------------------------------------------------------------------------
# Fused conv(3x3x3, pad=1) + bias + LeakyReLU *stack* kernel.
# One batch element per grid step; activations stay resident in VMEM
# (bf16 padded ping-pong buffers) between layers.
# ----------------------------------------------------------------------------
def _make_stack_kernel(D, H, W, chans):
    """chans = [C0, C1, ..., Cn]; layer l maps C_l -> C_{l+1} channels.

    Ref order: x_ref, (w_0, b_0, ..., w_{n-1}, b_{n-1}), o_ref, pbuf_in, mids...
      x_ref : (1, D*H, W*C0)        lane-dense flat input (bf16)
      w_l   : (9, Wp*C_l, W*C_{l+1}) bf16 banded weights (one per (kd,kh) tap)
      b_l   : (1, W*C_{l+1})        f32, bias tiled over the W lane groups
      o_ref : (1, D*H, W*Cn)        lane-dense flat output
      pbuf_*: (Dp*Hp, Wp*C)         bf16 zero-padded activation scratch,
                                    row = dp*Hp + hp, lane = wi*C + ci
    """
    Dp, Hp, Wp = D + 2, H + 2, W + 2
    Lv = D * Hp - 2                       # rows of the shifted-add accumulator
    n_layers = len(chans) - 1
    n_mid = min(n_layers - 1, 2)

    def kernel(*refs):
        x_ref = refs[0]
        wb = refs[1:1 + 2 * n_layers]
        o_ref = refs[1 + 2 * n_layers]
        bufs = refs[2 + 2 * n_layers:]
        pbuf_in, mids = bufs[0], bufs[1:]

        c0 = chans[0]

        # Zero scratch once per grid step (halo rows/lanes are never written
        # by the layer loop; interiors are fully overwritten each layer).
        for buf in bufs:
            buf[...] = jnp.zeros(buf.shape, buf.dtype)

        # Scatter input into the padded interior: rows (d+1)*Hp + 1 .. +H,
        # lanes c0 .. (W+1)*c0  (D contiguous block stores, no relayout).
        for d in range(D):
            pbuf_in[(d + 1) * Hp + 1:(d + 1) * Hp + 1 + H,
                    c0:(W + 1) * c0] = (
                x_ref[0, d * H:(d + 1) * H, :].astype(pbuf_in.dtype))

        src = pbuf_in
        for l in range(n_layers):
            cout = chans[l + 1]
            w_ref = wb[2 * l]          # (9, Wp*cin, W*cout) bf16
            b_ref = wb[2 * l + 1]      # (1, W*cout)         f32

            pin = src[...]             # (Dp*Hp, Wp*cin) bf16, loaded once

            # 9 matmuls (kw reduction inside the banded weight), then combine
            # the (kd, kh) taps with sublane-offset shifted adds.
            acc = None
            for kd in range(3):
                for kh in range(3):
                    r = jnp.dot(pin, w_ref[kd * 3 + kh],
                                preferred_element_type=jnp.float32)
                    off = kd * Hp + kh
                    part = r[off:off + Lv]              # (Lv, W*cout) f32
                    acc = part if acc is None else acc + part

            acc = acc + b_ref[...]                      # bias (f32)
            acc = jnp.where(acc > 0, acc, NEG_SLOPE * acc)  # LeakyReLU

            if l == n_layers - 1:
                # acc row frame is r0 = d*Hp + h; output rows are d*H + h.
                for d in range(D):
                    o_ref[0, d * H:(d + 1) * H, :] = (
                        acc[d * Hp:d * Hp + H].astype(o_ref.dtype))
            else:
                dst = mids[l % n_mid]
                for d in range(D):
                    dst[(d + 1) * Hp + 1:(d + 1) * Hp + 1 + H,
                        cout:(W + 1) * cout] = (
                        acc[d * Hp:d * Hp + H].astype(dst.dtype))
                src = dst

    return kernel, n_mid


def conv_stack(x_flat, layers, D, H, W, out_dtype=jnp.float32):
    """Fused stack of Conv3d(3, pad=1) + bias + LeakyReLU layers.

    x_flat: (N, D*H, W*C0) channels-last flat slab (any float dtype).
    layers: list of (w, b) with w in torch layout (Cout, Cin, 3, 3, 3).
    Returns (N, D*H, W*Cout_last) in out_dtype.
    """
    N = x_flat.shape[0]
    C0 = x_flat.shape[2] // W
    n_layers = len(layers)
    chans = [C0] + [int(w.shape[0]) for w, _ in layers]
    cout_f = chans[-1]
    Dp, Hp, Wp = D + 2, H + 2, W + 2

    inputs = [x_flat.astype(jnp.bfloat16)]
    in_specs = [pl.BlockSpec((1, D * H, W * C0), lambda n: (n, 0, 0))]
    for w, b in layers:
        cout, cin = int(w.shape[0]), int(w.shape[1])
        wt = _banded_weights(w, W)                           # (9, Wp*cin, W*cout)
        inputs.append(wt)
        in_specs.append(
            pl.BlockSpec((9, Wp * cin, W * cout), lambda n: (0, 0, 0)))
        bt = jnp.tile(b.reshape(1, cout).astype(jnp.float32), (1, W))
        inputs.append(bt)                                    # (1, W*cout)
        in_specs.append(pl.BlockSpec((1, W * cout), lambda n: (0, 0)))

    kernel, n_mid = _make_stack_kernel(D, H, W, chans)

    scratch = [pltpu.VMEM((Dp * Hp, Wp * C0), jnp.bfloat16)]
    if n_mid:
        mid_ch = chans[1]
        assert all(c == mid_ch for c in chans[1:n_layers]), \
            "intermediate layers must share a channel count"
        scratch += [pltpu.VMEM((Dp * Hp, Wp * mid_ch), jnp.bfloat16)
                    for _ in range(n_mid)]

    out = pl.pallas_call(
        kernel,
        out_shape=jax.ShapeDtypeStruct((N, D * H, W * cout_f), out_dtype),
        grid=(N,),
        in_specs=in_specs,
        out_specs=pl.BlockSpec((1, D * H, W * cout_f), lambda n: (n, 0, 0)),
        scratch_shapes=scratch,
        compiler_params=pltpu.CompilerParams(
            dimension_semantics=("parallel",),
            vmem_limit_bytes=_vmem_limit_bytes()),
    )(*inputs)
    return out


# ----------------------------------------------------------------------------
# VoxelShuffle (pure layout glue; stays in XLA between the two kernels)
# TODO(synk): VoxelShuffle source not provided; assumes the standard 3D
# pixel-shuffle convention (channel split (C, r, r, r), C outermost).
# ----------------------------------------------------------------------------
def voxel_shuffle_cl(x, r):
    N, D, H, W, Cr3 = x.shape
    C = Cr3 // (r ** 3)
    x = x.reshape(N, D, H, W, C, r, r, r)
    x = jnp.transpose(x, (0, 1, 5, 2, 6, 3, 7, 4))
    return x.reshape(N, D * r, H * r, W * r, C)


def voxel_shuffle_nchw(x, r):
    N, Cr3, D, H, W = x.shape
    C = Cr3 // (r ** 3)
    x = x.reshape(N, C, r, r, r, D, H, W)
    x = jnp.transpose(x, (0, 1, 5, 2, 6, 3, 7, 4))
    return x.reshape(N, C, D * r, H * r, W * r)


# ----------------------------------------------------------------------------
# Deterministic parameter init (shapes follow UpBlock.__init__)
# ----------------------------------------------------------------------------
def _kaiming_uniform(key, shape, fan_in, gain=math.sqrt(2.0)):
    bound = gain * math.sqrt(3.0 / fan_in)
    return jax.random.uniform(key, shape, jnp.float32, -bound, bound)


def init_params(key, in1, in2, out_ch, n_layers, upfactor):
    keys = iter(jax.random.split(key, 2 + 2 * n_layers))
    r3 = upfactor ** 3

    # up[0]: Conv3d(in1 -> in1*r^3, 3, pad=1) with ICNR init:
    # sub of shape (in1, in1, 3,3,3), kernel[i] = sub[i // r^3]
    sub = _kaiming_uniform(next(keys), (in1, in1, 3, 3, 3), fan_in=in1 * 27)
    up_w = jnp.repeat(sub, r3, axis=0)               # (in1*r^3, in1, 3, 3, 3)
    bb = 1.0 / math.sqrt(in1 * 27)
    up_b = jax.random.uniform(next(keys), (in1 * r3,), jnp.float32, -bb, bb)

    convs = []
    cin = in1 + in2
    for _ in range(n_layers):
        w = _kaiming_uniform(next(keys), (out_ch, cin, 3, 3, 3), fan_in=cin * 27)
        bb = 1.0 / math.sqrt(cin * 27)
        b = jax.random.uniform(next(keys), (out_ch,), jnp.float32, -bb, bb)
        convs.append((w, b))
        cin = out_ch
    return {"up_w": up_w, "up_b": up_b, "convs": convs}


# ----------------------------------------------------------------------------
# UpBlock forward (Pallas path)
# ----------------------------------------------------------------------------
def upblock_forward(x1, x2, params, upfactor):
    """x1: (N, in1, D, H, W), x2: (N, in2, D*up, H*up, W*up) — PyTorch NCDHW."""
    N, in1, D, H, W = x1.shape
    in2 = x2.shape[1]
    r = upfactor
    Dr, Hr, Wr = D * r, H * r, W * r

    # up path: fused conv + LeakyReLU kernel (bf16 output for the handoff).
    x1f = jnp.transpose(x1, (0, 2, 3, 4, 1)).reshape(N, D * H, W * in1)
    u = conv_stack(x1f, [(params["up_w"], params["up_b"])], D, H, W,
                   out_dtype=jnp.bfloat16)
    u = u.reshape(N, D, H, W, in1 * r ** 3)
    x3 = voxel_shuffle_cl(u, r)                             # (N,Dr,Hr,Wr,in1) bf16

    # skip concat (cat([x2, x3], dim=1)) — bf16 XLA layout glue between kernels.
    x2c = jnp.transpose(x2, (0, 2, 3, 4, 1)).astype(jnp.bfloat16)
    y0 = jnp.concatenate([x2c, x3], axis=-1)                # (N,Dr,Hr,Wr,in2+in1)
    C0 = in1 + in2
    y0f = y0.reshape(N, Dr * Hr, Wr * C0)

    # conv stack: all n_layers conv+LeakyReLU layers fused in one pallas_call.
    y = conv_stack(y0f, params["convs"], Dr, Hr, Wr, out_dtype=jnp.float32)
    y = y.reshape(N, Dr, Hr, Wr, -1)
    return jnp.transpose(y, (0, 4, 1, 2, 3))                # back to NCDHW


# ----------------------------------------------------------------------------
# Pure-JAX f32 reference (for correctness check)
# ----------------------------------------------------------------------------
def _conv3d_ref(x, w, b):
    y = lax.conv_general_dilated(
        x, w, window_strides=(1, 1, 1),
        padding=((1, 1), (1, 1), (1, 1)),
        dimension_numbers=("NCDHW", "OIDHW", "NCDHW"))
    y = y + b.reshape(1, -1, 1, 1, 1)
    return jnp.where(y > 0, y, NEG_SLOPE * y)


def upblock_forward_ref(x1, x2, params, upfactor):
    u = _conv3d_ref(x1, params["up_w"], params["up_b"])
    x3 = voxel_shuffle_nchw(u, upfactor)
    y = jnp.concatenate([x2, x3], axis=1)
    for w, b in params["convs"]:
        y = _conv3d_ref(y, w, b)
    return y


if __name__ == "__main__":
    in1, in2, out_ch = 4, 4, 8
    n_layers_in_block, upfactor = 2, 2
    N, D, H, W = 2, 4, 4, 4

    key = jax.random.PRNGKey(0)
    k1, k2, kp = jax.random.split(key, 3)
    x1 = jax.random.normal(k1, (N, in1, D, H, W), jnp.float32)
    x2 = jax.random.normal(
        k2, (N, in2, D * upfactor, H * upfactor, W * upfactor), jnp.float32)
    params = init_params(kp, in1, in2, out_ch, n_layers_in_block, upfactor)

    out = jax.block_until_ready(upblock_forward(x1, x2, params, upfactor))
    assert out.shape == (N, out_ch, D * upfactor, H * upfactor, W * upfactor)

    ref = jax.block_until_ready(upblock_forward_ref(x1, x2, params, upfactor))
    # bf16 activations/weights with f32 accumulation -> relative tol vs f32 ref.
    err = float(jnp.max(jnp.abs(out - ref)))
    scale = float(jnp.max(jnp.abs(ref))) + 1e-6
    assert err / scale < 5e-2, f"mismatch vs reference: {err} (ref max {scale})"
    print("KERNEL_OK")
</pallas_src>

<mosaic_0001>
module attributes {stable_mosaic.version = 11 : i64} {
  func.func @kernel(%arg0: i32, %arg1: memref<1x16x16xbf16, #tpu.memory_space<vmem>>, %arg2: memref<9x24x128xbf16, #tpu.memory_space<vmem>>, %arg3: memref<1x128xf32, #tpu.memory_space<vmem>>, %arg4: memref<1x16x128xbf16, #tpu.memory_space<vmem>>, %arg5: memref<36x24xbf16, #tpu.memory_space<vmem>>) attributes {dimension_semantics = [#tpu.dimension_semantics<parallel>], iteration_bounds = array<i64: 2>, scalar_prefetch = 0 : i64, scratch_operands = 1 : i64, tpu.core_type = #tpu.core_type<tc>, window_params = [{transform_indices = @transform_0, window_bounds = array<i64: 1, 16, 16>}, {pipeline_mode = #tpu.pipeline_mode<synchronous>, transform_indices = @transform_1, window_bounds = array<i64: 9, 24, 128>}, {pipeline_mode = #tpu.pipeline_mode<synchronous>, transform_indices = @transform_2, window_bounds = array<i64: 1, 128>}, {transform_indices = @transform_3, window_bounds = array<i64: 1, 16, 128>}]} {
    %cst = arith.constant 0.000000e+00 : bf16
    %0 = vector.broadcast %cst : bf16 to vector<36x24xbf16>
    %c0 = arith.constant 0 : index
    %c0_0 = arith.constant 0 : index
    %1 = vector.load %arg5[%c0, %c0_0] : memref<36x24xbf16, #tpu.memory_space<vmem>>, vector<36x24xbf16>
    tpu.vector_store %arg5[%c0, %c0_0], %0 {strides = array<i32>} : memref<36x24xbf16, #tpu.memory_space<vmem>>, vector<36x24xbf16>,
    %c0_1 = arith.constant 0 : index
    %c0_2 = arith.constant 0 : index
    %c0_3 = arith.constant 0 : index
    %2 = vector.load %arg1[%c0_1, %c0_2, %c0_3] : memref<1x16x16xbf16, #tpu.memory_space<vmem>>, vector<1x4x16xbf16>
    %3 = vector.shape_cast %2 : vector<1x4x16xbf16> to vector<4x16xbf16>
    %c7 = arith.constant 7 : index
    %c4 = arith.constant 4 : index
    %4 = vector.load %arg5[%c7, %c4] : memref<36x24xbf16, #tpu.memory_space<vmem>>, vector<4x16xbf16>
    tpu.vector_store %arg5[%c7, %c4], %3 {strides = array<i32>} : memref<36x24xbf16, #tpu.memory_space<vmem>>, vector<4x16xbf16>,
    %c0_4 = arith.constant 0 : index
    %c4_5 = arith.constant 4 : index
    %c0_6 = arith.constant 0 : index
    %5 = vector.load %arg1[%c0_4, %c4_5, %c0_6] : memref<1x16x16xbf16, #tpu.memory_space<vmem>>, vector<1x4x16xbf16>
    %6 = vector.shape_cast %5 : vector<1x4x16xbf16> to vector<4x16xbf16>
    %c13 = arith.constant 13 : index
    %c4_7 = arith.constant 4 : index
    %7 = vector.load %arg5[%c13, %c4_7] : memref<36x24xbf16, #tpu.memory_space<vmem>>, vector<4x16xbf16>
    tpu.vector_store %arg5[%c13, %c4_7], %6 {strides = array<i32>} : memref<36x24xbf16, #tpu.memory_space<vmem>>, vector<4x16xbf16>,
    %c0_8 = arith.constant 0 : index
    %c8 = arith.constant 8 : index
    %c0_9 = arith.constant 0 : index
    %8 = vector.load %arg1[%c0_8, %c8, %c0_9] : memref<1x16x16xbf16, #tpu.memory_space<vmem>>, vector<1x4x16xbf16>
    %9 = vector.shape_cast %8 : vector<1x4x16xbf16> to vector<4x16xbf16>
    %c19 = arith.constant 19 : index
    %c4_10 = arith.constant 4 : index
    %10 = vector.load %arg5[%c19, %c4_10] : memref<36x24xbf16, #tpu.memory_space<vmem>>, vector<4x16xbf16>
    tpu.vector_store %arg5[%c19, %c4_10], %9 {strides = array<i32>} : memref<36x24xbf16, #tpu.memory_space<vmem>>, vector<4x16xbf16>,
    %c0_11 = arith.constant 0 : index
    %c12 = arith.constant 12 : index
    %c0_12 = arith.constant 0 : index
    %11 = vector.load %arg1[%c0_11, %c12, %c0_12] : memref<1x16x16xbf16, #tpu.memory_space<vmem>>, vector<1x4x16xbf16>
    %12 = vector.shape_cast %11 : vector<1x4x16xbf16> to vector<4x16xbf16>
    %c25 = arith.constant 25 : index
    %c4_13 = arith.constant 4 : index
    %13 = vector.load %arg5[%c25, %c4_13] : memref<36x24xbf16, #tpu.memory_space<vmem>>, vector<4x16xbf16>
    tpu.vector_store %arg5[%c25, %c4_13], %12 {strides = array<i32>} : memref<36x24xbf16, #tpu.memory_space<vmem>>, vector<4x16xbf16>,
    %c0_14 = arith.constant 0 : index
    %c0_15 = arith.constant 0 : index
    %14 = vector.load %arg5[%c0_14, %c0_15] : memref<36x24xbf16, #tpu.memory_space<vmem>>, vector<36x24xbf16>
    %c0_16 = arith.constant 0 : index
    %c0_17 = arith.constant 0 : index
    %c0_18 = arith.constant 0 : index
    %15 = vector.load %arg2[%c0_16, %c0_17, %c0_18] : memref<9x24x128xbf16, #tpu.memory_space<vmem>>, vector<1x24x128xbf16>
    %16 = vector.shape_cast %15 : vector<1x24x128xbf16> to vector<24x128xbf16>
    %cst_19 = arith.constant dense<0.000000e+00> : vector<36x128xf32>
    %17 = tpu.matmul %14, %16, %cst_19 {dimension_numbers = #tpu.dot_dimension_numbers<[1], [0], [0], [1], [0, 0, 1, 1], [], []>} : vector<36x24xbf16>, vector<24x128xbf16>, vector<36x128xf32> -> vector<36x128xf32>
    %18 = vector.extract_strided_slice %17 {offsets = [0, 0], sizes = [22, 128], strides = [1, 1]} : vector<36x128xf32> to vector<22x128xf32>
    %c1 = arith.constant 1 : index
    %c0_20 = arith.constant 0 : index
    %c0_21 = arith.constant 0 : index
    %19 = vector.load %arg2[%c1, %c0_20, %c0_21] : memref<9x24x128xbf16, #tpu.memory_space<vmem>>, vector<1x24x128xbf16>
    %20 = vector.shape_cast %19 : vector<1x24x128xbf16> to vector<24x128xbf16>
    %cst_22 = arith.constant dense<0.000000e+00> : vector<36x128xf32>
    %21 = tpu.matmul %14, %20, %cst_22 {dimension_numbers = #tpu.dot_dimension_numbers<[1], [0], [0], [1], [0, 0, 1, 1], [], []>} : vector<36x24xbf16>, vector<24x128xbf16>, vector<36x128xf32> -> vector<36x128xf32>
    %22 = vector.extract_strided_slice %21 {offsets = [1, 0], sizes = [22, 128], strides = [1, 1]} : vector<36x128xf32> to vector<22x128xf32>
    %23 = arith.addf %18, %22 : vector<22x128xf32>
    %c2 = arith.constant 2 : index
    %c0_23 = arith.constant 0 : index
    %c0_24 = arith.constant 0 : index
    %24 = vector.load %arg2[%c2, %c0_23, %c0_24] : memref<9x24x128xbf16, #tpu.memory_space<vmem>>, vector<1x24x128xbf16>
    %25 = vector.shape_cast %24 : vector<1x24x128xbf16> to vector<24x128xbf16>
    %cst_25 = arith.constant dense<0.000000e+00> : vector<36x128xf32>
    %26 = tpu.matmul %14, %25, %cst_25 {dimension_numbers = #tpu.dot_dimension_numbers<[1], [0], [0], [1], [0, 0, 1, 1], [], []>} : vector<36x24xbf16>, vector<24x128xbf16>, vector<36x128xf32> -> vector<36x128xf32>
    %27 = vector.extract_strided_slice %26 {offsets = [2, 0], sizes = [22, 128], strides = [1, 1]} : vector<36x128xf32> to vector<22x128xf32>
    %28 = arith.addf %23, %27 : vector<22x128xf32>
    %c3 = arith.constant 3 : index
    %c0_26 = arith.constant 0 : index
    %c0_27 = arith.constant 0 : index
    %29 = vector.load %arg2[%c3, %c0_26, %c0_27] : memref<9x24x128xbf16, #tpu.memory_space<vmem>>, vector<1x24x128xbf16>
    %30 = vector.shape_cast %29 : vector<1x24x128xbf16> to vector<24x128xbf16>
    %cst_28 = arith.constant dense<0.000000e+00> : vector<36x128xf32>
    %31 = tpu.matmul %14, %30, %cst_28 {dimension_numbers = #tpu.dot_dimension_numbers<[1], [0], [0], [1], [0, 0, 1, 1], [], []>} : vector<36x24xbf16>, vector<24x128xbf16>, vector<36x128xf32> -> vector<36x128xf32>
    %32 = vector.extract_strided_slice %31 {offsets = [6, 0], sizes = [22, 128], strides = [1, 1]} : vector<36x128xf32> to vector<22x128xf32>
    %33 = arith.addf %28, %32 : vector<22x128xf32>
    %c4_29 = arith.constant 4 : index
    %c0_30 = arith.constant 0 : index
    %c0_31 = arith.constant 0 : index
    %34 = vector.load %arg2[%c4_29, %c0_30, %c0_31] : memref<9x24x128xbf16, #tpu.memory_space<vmem>>, vector<1x24x128xbf16>
    %35 = vector.shape_cast %34 : vector<1x24x128xbf16> to vector<24x128xbf16>
    %cst_32 = arith.constant dense<0.000000e+00> : vector<36x128xf32>
    %36 = tpu.matmul %14, %35, %cst_32 {dimension_numbers = #tpu.dot_dimension_numbers<[1], [0], [0], [1], [0, 0, 1, 1], [], []>} : vector<36x24xbf16>, vector<24x128xbf16>, vector<36x128xf32> -> vector<36x128xf32>
    %37 = vector.extract_strided_slice %36 {offsets = [7, 0], sizes = [22, 128], strides = [1, 1]} : vector<36x128xf32> to vector<22x128xf32>
    %38 = arith.addf %33, %37 : vector<22x128xf32>
    %c5 = arith.constant 5 : index
    %c0_33 = arith.constant 0 : index
    %c0_34 = arith.constant 0 : index
    %39 = vector.load %arg2[%c5, %c0_33, %c0_34] : memref<9x24x128xbf16, #tpu.memory_space<vmem>>, vector<1x24x128xbf16>
    %40 = vector.shape_cast %39 : vector<1x24x128xbf16> to vector<24x128xbf16>
    %cst_35 = arith.constant dense<0.000000e+00> : vector<36x128xf32>
    %41 = tpu.matmul %14, %40, %cst_35 {dimension_numbers = #tpu.dot_dimension_numbers<[1], [0], [0], [1], [0, 0, 1, 1], [], []>} : vector<36x24xbf16>, vector<24x128xbf16>, vector<36x128xf32> -> vector<36x128xf32>
    %42 = vector.extract_strided_slice %41 {offsets = [8, 0], sizes = [22, 128], strides = [1, 1]} : vector<36x128xf32> to vector<22x128xf32>
    %43 = arith.addf %38, %42 : vector<22x128xf32>
    %c6 = arith.constant 6 : index
    %c0_36 = arith.constant 0 : index
    %c0_37 = arith.constant 0 : index
    %44 = vector.load %arg2[%c6, %c0_36, %c0_37] : memref<9x24x128xbf16, #tpu.memory_space<vmem>>, vector<1x24x128xbf16>
    %45 = vector.shape_cast %44 : vector<1x24x128xbf16> to vector<24x128xbf16>
    %cst_38 = arith.constant dense<0.000000e+00> : vector<36x128xf32>
    %46 = tpu.matmul %14, %45, %cst_38 {dimension_numbers = #tpu.dot_dimension_numbers<[1], [0], [0], [1], [0, 0, 1, 1], [], []>} : vector<36x24xbf16>, vector<24x128xbf16>, vector<36x128xf32> -> vector<36x128xf32>
    %47 = vector.extract_strided_slice %46 {offsets = [12, 0], sizes = [22, 128], strides = [1, 1]} : vector<36x128xf32> to vector<22x128xf32>
    %48 = arith.addf %43, %47 : vector<22x128xf32>
    %c7_39 = arith.constant 7 : index
    %c0_40 = arith.constant 0 : index
    %c0_41 = arith.constant 0 : index
    %49 = vector.load %arg2[%c7_39, %c0_40, %c0_41] : memref<9x24x128xbf16, #tpu.memory_space<vmem>>, vector<1x24x128xbf16>
    %50 = vector.shape_cast %49 : vector<1x24x128xbf16> to vector<24x128xbf16>
    %cst_42 = arith.constant dense<0.000000e+00> : vector<36x128xf32>
    %51 = tpu.matmul %14, %50, %cst_42 {dimension_numbers = #tpu.dot_dimension_numbers<[1], [0], [0], [1], [0, 0, 1, 1], [], []>} : vector<36x24xbf16>, vector<24x128xbf16>, vector<36x128xf32> -> vector<36x128xf32>
    %52 = vector.extract_strided_slice %51 {offsets = [13, 0], sizes = [22, 128], strides = [1, 1]} : vector<36x128xf32> to vector<22x128xf32>
    %53 = arith.addf %48, %52 : vector<22x128xf32>
    %c8_43 = arith.constant 8 : index
    %c0_44 = arith.constant 0 : index
    %c0_45 = arith.constant 0 : index
    %54 = vector.load %arg2[%c8_43, %c0_44, %c0_45] : memref<9x24x128xbf16, #tpu.memory_space<vmem>>, vector<1x24x128xbf16>
    %55 = vector.shape_cast %54 : vector<1x24x128xbf16> to vector<24x128xbf16>
    %cst_46 = arith.constant dense<0.000000e+00> : vector<36x128xf32>
    %56 = tpu.matmul %14, %55, %cst_46 {dimension_numbers = #tpu.dot_dimension_numbers<[1], [0], [0], [1], [0, 0, 1, 1], [], []>} : vector<36x24xbf16>, vector<24x128xbf16>, vector<36x128xf32> -> vector<36x128xf32>
    %57 = vector.extract_strided_slice %56 {offsets = [14, 0], sizes = [22, 128], strides = [1, 1]} : vector<36x128xf32> to vector<22x128xf32>
    %58 = arith.addf %53, %57 : vector<22x128xf32>
    %c0_47 = arith.constant 0 : index
    %c0_48 = arith.constant 0 : index
    %59 = vector.load %arg3[%c0_47, %c0_48] : memref<1x128xf32, #tpu.memory_space<vmem>>, vector<1x128xf32>
    %60 = vector.broadcast %59 : vector<1x128xf32> to vector<22x128xf32>
    %61 = arith.addf %58, %60 : vector<22x128xf32>
    %cst_49 = arith.constant 0.000000e+00 : f32
    %62 = vector.broadcast %cst_49 : f32 to vector<22x128xf32>
    %63 = arith.cmpf ogt, %61, %62 : vector<22x128xf32>
    %cst_50 = arith.constant 0.00999999977 : f32
    %64 = vector.broadcast %cst_50 : f32 to vector<22x128xf32>
    %65 = arith.mulf %64, %61 : vector<22x128xf32>
    %66 = arith.select %63, %61, %65 : vector<22x128xi1>, vector<22x128xf32>
    %67 = vector.extract_strided_slice %66 {offsets = [0, 0], sizes = [4, 128], strides = [1, 1]} : vector<22x128xf32> to vector<4x128xf32>
    %68 = arith.truncf %67 : vector<4x128xf32> to vector<4x128xbf16>
    %c0_51 = arith.constant 0 : index
    %c0_52 = arith.constant 0 : index
    %c0_53 = arith.constant 0 : index
    %69 = vector.load %arg4[%c0_51, %c0_52, %c0_53] : memref<1x16x128xbf16, #tpu.memory_space<vmem>>, vector<1x4x128xbf16>
    %70 = vector.shape_cast %69 : vector<1x4x128xbf16> to vector<4x128xbf16>
    %71 = vector.shape_cast %68 : vector<4x128xbf16> to vector<1x4x128xbf16>
    tpu.vector_store %arg4[%c0_51, %c0_52, %c0_53], %71 {strides = array<i32>} : memref<1x16x128xbf16, #tpu.memory_space<vmem>>, vector<1x4x128xbf16>,
    %72 = vector.extract_strided_slice %66 {offsets = [6, 0], sizes = [4, 128], strides = [1, 1]} : vector<22x128xf32> to vector<4x128xf32>
    %73 = arith.truncf %72 : vector<4x128xf32> to vector<4x128xbf16>
    %c0_54 = arith.constant 0 : index
    %c4_55 = arith.constant 4 : index
    %c0_56 = arith.constant 0 : index
    %74 = vector.load %arg4[%c0_54, %c4_55, %c0_56] : memref<1x16x128xbf16, #tpu.memory_space<vmem>>, vector<1x4x128xbf16>
    %75 = vector.shape_cast %74 : vector<1x4x128xbf16> to vector<4x128xbf16>
    %76 = vector.shape_cast %73 : vector<4x128xbf16> to vector<1x4x128xbf16>
    tpu.vector_store %arg4[%c0_54, %c4_55, %c0_56], %76 {strides = array<i32>} : memref<1x16x128xbf16, #tpu.memory_space<vmem>>, vector<1x4x128xbf16>,
    %77 = vector.extract_strided_slice %66 {offsets = [12, 0], sizes = [4, 128], strides = [1, 1]} : vector<22x128xf32> to vector<4x128xf32>
    %78 = arith.truncf %77 : vector<4x128xf32> to vector<4x128xbf16>
    %c0_57 = arith.constant 0 : index
    %c8_58 = arith.constant 8 : index
    %c0_59 = arith.constant 0 : index
    %79 = vector.load %arg4[%c0_57, %c8_58, %c0_59] : memref<1x16x128xbf16, #tpu.memory_space<vmem>>, vector<1x4x128xbf16>
    %80 = vector.shape_cast %79 : vector<1x4x128xbf16> to vector<4x128xbf16>
    %81 = vector.shape_cast %78 : vector<4x128xbf16> to vector<1x4x128xbf16>
    tpu.vector_store %arg4[%c0_57, %c8_58, %c0_59], %81 {strides = array<i32>} : memref<1x16x128xbf16, #tpu.memory_space<vmem>>, vector<1x4x128xbf16>,
    %82 = vector.extract_strided_slice %66 {offsets = [18, 0], sizes = [4, 128], strides = [1, 1]} : vector<22x128xf32> to vector<4x128xf32>
    %83 = arith.truncf %82 : vector<4x128xf32> to vector<4x128xbf16>
    %c0_60 = arith.constant 0 : index
    %c12_61 = arith.constant 12 : index
    %c0_62 = arith.constant 0 : index
    %84 = vector.load %arg4[%c0_60, %c12_61, %c0_62] : memref<1x16x128xbf16, #tpu.memory_space<vmem>>, vector<1x4x128xbf16>
    %85 = vector.shape_cast %84 : vector<1x4x128xbf16> to vector<4x128xbf16>
    %86 = vector.shape_cast %83 : vector<4x128xbf16> to vector<1x4x128xbf16>
    tpu.vector_store %arg4[%c0_60, %c12_61, %c0_62], %86 {strides = array<i32>} : memref<1x16x128xbf16, #tpu.memory_space<vmem>>, vector<1x4x128xbf16>,
    return
  }
  func.func @transform_0(%arg0: i32) -> (i32, i32, i32) {
    %c0_i32 = arith.constant 0 : i32
    %c0_i32_0 = arith.constant 0 : i32
    %c0_i32_1 = arith.constant 0 : i32
    return %arg0, %c0_i32, %c0_i32_0 : i32, i32, i32
  }
  func.func @transform_1(%arg0: i32) -> (i32, i32, i32) {
    %c0_i32 = arith.constant 0 : i32
    %c0_i32_0 = arith.constant 0 : i32
    %c0_i32_1 = arith.constant 0 : i32
    %c0_i32_2 = arith.constant 0 : i32
    return %c0_i32, %c0_i32_0, %c0_i32_1 : i32, i32, i32
  }
  func.func @transform_2(%arg0: i32) -> (i32, i32) {
    %c0_i32 = arith.constant 0 : i32
    %c0_i32_0 = arith.constant 0 : i32
    %c0_i32_1 = arith.constant 0 : i32
    return %c0_i32, %c0_i32_0 : i32, i32
  }
  func.func @transform_3(%arg0: i32) -> (i32, i32, i32) {
    %c0_i32 = arith.constant 0 : i32
    %c0_i32_0 = arith.constant 0 : i32
    %c0_i32_1 = arith.constant 0 : i32
    return %arg0, %c0_i32, %c0_i32_0 : i32, i32, i32
  }
}

</mosaic_0001>

<bundles_post_ra>
// kernel: tpu_custom_call.1
= control target key start
LH: loop header
LB: loop body
LE: loop exit
PB: predicated region body
PF: predicated region fallthrough
CT: control target
= control target key end

     0   :  { %8 = vsyncpa [#allocation4], 0  ;;  %s2133_s0 = inlined_call_operand.hbm [shape: bf16[2,16,16], index: 0, kind: input, shape index: {}]   ;;  %s2134_s1 = inlined_call_operand.hbm [shape: bf16[9,24,128], index: 1, kind: input, shape index: {}]   ;;  %s2135_s2 = inlined_call_operand.vmem [shape: f32[1,128], index: 2, kind: input, shape index: {}]   ;;  %s2136_s3 = inlined_call_operand.hbm [shape: bf16[2,16,128], index: 3, kind: output, shape index: {}]  }
   0x1   :  { %10 = vsyncpa [#allocation4 + $0x1], 0 }
   0x2   :  { %11 = vsyncpa [#allocation7], 0 }
   0x3   :  { %12 = vsyncpa [#allocation5], 0 }
   0x4   :  { %14 = vsyncpa [#allocation5 + $0x1], 0  ;;  %s1749_s12 = smov 0   ;;  %s1751_s13 = smov 0  }
   0x5   :  { %s1753_s14 = smov 0   ;;  %s1755_s15 = smov 0  }
   0x6 LB: > { %s1770_s16 = sadd.s32 4294967295, %s1717_s15   ;;  %s1236_s17 = sadd.s32 4294967294, %s1717_s15   ;;  %s1717_s15 = sphi %s1755_s15, %s2156_s15   ;;  %s1713_s14 = sphi %s1753_s14, %s2155_s14   ;;  %s1709_s13 = sphi %s1751_s13, %s2154_s13   ;;  %s1705_s12 = sphi %s1749_s12, %s2153_s12  }
   0x7   : > { %p40_p0 = scmp.ne.s32.totalorder %s1709_s13, %s1705_s12  ;;  %p2137_p1 = scmp.eq.s32.totalorder %s1770_s16, 0 }
   0x8   : > { %p112_p3 = scmp.eq.s32.totalorder %s1236_s17, 1  ;;  %p1237_p5 = scmp.ge.s32.totalorder %s1717_s15, 1 }
   0x9   : > { %p1779_p4 = por %p2137_p1, %p40_p0  ;;  %p119_p7 = scmp.lt.s32.totalorder %s1717_s15, 3 }
   0xa   : > { %p1784_p6 = por %p112_p3, %p40_p0  ;;  %s1719_s21 = smov [#allocation6]  }
   0xb   : > { %s2140_s18 = scalar_select %p1779_p4, 1, 0 }
   0xc   : > { %s2141_s19 = scalar_select %p1784_p6, 1, 0 }
   0xd   : > { %p1789_p8 = pnand %p1237_p5, %p119_p7  ;;  %s131_s22 = sshll.u32 %s1719_s21, 4  ;;  %s1793_s22 = int_to_ptr.vmem [resolvable:$true] %s131_s22 }
   0xe   : > { %s1805_s24 = sadd.s32 1, %s1717_s15   ;;  %s27_s25 = sadd.s32 1, %s1713_s14 }
   0xf   : > { %s2142_s20 = scalar_select %p1789_p8, 1, 0 }
  0x10   : > { %p1514_p9 = pneg %p1789_p8  ;;  %s24_s26 = ssub.s32 %s1717_s15, %s1805_s24 }
  0x11   : > { %s1589_s29 = scalar_lea.hbm %s2134_s1, 1728 }
  0x12   : > { %p1800_p11 = pnand %p1514_p9, %p2137_p1  ;;  %p1590_p12 = scmp.ne.s32.totalorder %s2134_s1, %s1589_s29 }
  0x13   : > { %p1596_p5 = scmp.lt.u32.totalorder %s1589_s29, %s2134_s1 }
  0x14   : > { %p1591_p13 = pneg %p1800_p11 }
  0x16   : > { %p1592_p0 = pnand %p1591_p13, %p1590_p12 }
  0x18   : > { %p1593_p3 = pneg %p1592_p0 }
  0x1a   : > { %p1598_p7 = pnand %p1596_p5, %p1593_p3 }
  0x1c   : > { %1601 = shalt.err (!%p1598_p7)
}
  0x1d   : > { %s1602_s7 = scalar_lea.vmem %s1793_s22, 1728  ;;  %p1610_p2 = scmp.lt.s32.totalorder %s1793_s22, %s1793_s22 }
  0x1e   : > { %p1603_p9 = scmp.ne.s32.totalorder %s1793_s22, %s1602_s7  ;;  %p1611_p6 = scmp.lt.s32.totalorder %s1602_s7, %s1602_s7 }
  0x20   : > { %p1605_p10 = pnand %p1603_p9, %p1591_p13  ;;  %p1612_p4 = por %p1611_p6, %p1610_p2 }
  0x22   : > { %p1606_p1 = pneg %p1605_p10 }
  0x24   : > { %p1613_p8 = pnand %p1612_p4, %p1606_p1 }
  0x26   : > { %1616 = shalt.err (!%p1613_p8)
}
  0x27   : > { %s1720_s8 = smov 64   ;;  %s1721_s9 = smov 4  }
  0x28   : > { %1517 = dma.hbm_to_vmem [thread:$0]  (!%p1800_p11), %s2134_s1, 1728, %s1793_s22, [#allocation7], %s1720_s8, %s1720_s8, %s1721_s9  }
  0x29   : > { %p25_p1 = scmp.eq.s32.totalorder %s24_s26, 0  ;;  %p34_p2 = scmp.ne.s32.totalorder %s1713_s14, %s1709_s13 }
  0x2a   : > { %p35_p4 = scmp.eq.s32.totalorder %s1717_s15, 0  ;;  %p1527_p6 = scmp.lt.s32.totalorder %s1717_s15, 2 }
  0x2b   : > { %s1839_s17 = scalar_select %p25_p1, %s1713_s14, %s27_s25  }
  0x2c   : > { %p36_p8 = por %p35_p4, %p34_p2  ;;  %p2144_p10 = scmp.eq.s32.totalorder %s1770_s16, 1 }
  0x2d   : > { %s148_s23 = sand.u32 1, %s1713_s14   ;;  %s1307_s27 = sshll.u32 %s1717_s15, 7 }
  0x2e   : > { %p1843_p12 = por %p2144_p10, %p34_p2  ;;  %s1240_s28 = sshll.u32 %s148_s23, 3 }
  0x2f   : > { %s1852_s4 = scalar_lea.hbm %s2133_s0, %s1307_s27  ;;  %s152_s22 = scalar_lea.vmem [#allocation3], %s1240_s28 }
  0x30   : > { %s159_s25 = sshll.u32 %s152_s22, 4  ;;  %p1854_p11 = pnand %p1527_p6, %p36_p8  ;;  %s1858_s25 = int_to_ptr.vmem [resolvable:$true] %s159_s25 }
  0x31   : > { %s1860_s5 = scalar_lea.sflag [#allocation4], %s148_s23  ;;  %s1617_s6 = scalar_lea.hbm %s1852_s4, 128 }
  0x32   : > { %p1618_p13 = scmp.ne.s32.totalorder %s1852_s4, %s1617_s6  ;;  %p1619_p0 = pneg %p1854_p11 }
  0x33   : > { %s1622_s11 = scalar_lea.hbm %s2133_s0, 256  ;;  %p1623_p7 = scmp.lt.u32.totalorder %s1852_s4, %s2133_s0 }
  0x34   : > { %p1620_p3 = pnand %p1619_p0, %p1618_p13  ;;  %p1624_p9 = scmp.lt.u32.totalorder %s1622_s11, %s1617_s6 }
  0x35   : > { %p1626_p2 = scmp.lt.u32.totalorder %s1617_s6, %s1852_s4 }
  0x36   : > { %p1621_p5 = pneg %p1620_p3  ;;  %p1625_p1 = por %p1624_p9, %p1623_p7 }
  0x38   : > { %p1627_p4 = por %p1626_p2, %p1625_p1 }
  0x3a   : > { %p1628_p6 = pnand %p1627_p4, %p1621_p5 }
  0x3c   : > { %1631 = shalt.err (!%p1628_p6)
}
  0x3d   : > { %s1632_s23 = scalar_lea.vmem %s1858_s25, 128  ;;  %s1722_s29 = smov [#allocation3]  }
  0x3e   : > { %p1633_p8 = scmp.ne.s32.totalorder %s1858_s25, %s1632_s23  ;;  %s1637_s30 = sshll.u32 %s1722_s29, 4  ;;  %s1638_s30 = int_to_ptr.vmem [resolvable:$false] %s1637_s30 }
  0x3f   : > { %s1639_s22 = scalar_lea.vmem %s1638_s30, 256  ;;  %p1640_p3 = scmp.lt.s32.totalorder %s1858_s25, %s1638_s30 }
  0x40   : > { %p1635_p10 = pnand %p1633_p8, %p1619_p0  ;;  %p1641_p7 = scmp.lt.s32.totalorder %s1639_s22, %s1632_s23 }
  0x42   : > { %p1636_p13 = pneg %p1635_p10  ;;  %p1642_p9 = por %p1641_p7, %p1640_p3 }
  0x44   : > { %p1643_p1 = pnand %p1642_p9, %p1636_p13 }
  0x46   : > { %1646 = shalt.err (!%p1643_p1)
}
  0x47   : > { %1521 = dma.hbm_to_vmem [thread:$0]  (!%p1854_p11), %s1852_s4, 128, %s1858_s25, %s1860_s5, %s1720_s8, %s1720_s8, %s1721_s9  }
  0x48   : > { %p2147_p0 = scmp.ne.s32.totalorder %s2142_s20, 0 }
  0x49   : > { %s1894_s6 = sand.u32 (!%p2147_p0), 1, %s1709_s13   ;;  %p2148_p5 = scmp.ne.s32.totalorder (!%p2147_p0), %s2140_s18, 0 }
  0x4a   : > { %171 = sbr.rel (%p2147_p0) target bundleno = 571 (0x23b), region = 32  ;;  %s1244_s7 = sshll.u32 (!%p2147_p0), %s1894_s6, 3 }
  0x4b   : > { %s174_s10 = scalar_lea.sflag (!%p2147_p0), [#allocation4], %s1894_s6  ;;  %s177_s26 = scalar_lea.vmem (!%p2147_p0), [#allocation3], %s1244_s7 }
  0x51   : > { %1692 = dma.done.wait (%p2148_p5), %s174_s10, 128  }
  0x52   : > { %1694 = vsyncadd (%p2148_p5), %s174_s10, 4294967168  ;;  %p2149_p11 = scmp.eq.s32.totalorder %s1770_s16, 0 }
  0x54   : > { %1696 = dma.done.wait (%p2149_p11), [#allocation7], 1728   ;;  %p2150_p2 = pmov %p2149_p11 }
  0x55   : > { %vm205_vm0 = vcmask 191488   ;;  %vm210_vm1 = vcmask 189440   ;;  %v1723_v0 = vmov 0   ;;  %v240_v1 = vld [vmem:[%s177_s26] sm:$0xc]  ;;  %v1570_v21 = vld [vmem:[#allocation6] sm:$0xff]  }
  0x56   : > { %1698 = vsyncadd (%p2150_p2), [#allocation7], 4294965568  ;;  %208 = vst.msk [vmem:[#allocation2 + $0x8] sm:$0xf] %vm205_vm0, %v1723_v0  ;;  %v285_v2 = vld [vmem:[%s177_s26 + $0x4] sm:$0xc] }
  0x57   : > { %211 = vst.msk [vmem:[#allocation2 + $0x10] sm:$0x3] %vm210_vm1, %v1723_v0  ;;  %v267_v3 = vld [vmem:[%s177_s26 + $0x4] sm:$0x3]  ;;  %v242_v4 = vshrl.u32 %v240_v1, 16  ;;  %v287_v5 = vshrl.u32 %v285_v2, 16 }
  0x58   : > { %206 = vst.msk [vmem:[#allocation2] sm:$0xf] %vm205_vm0, %v1723_v0  ;;  %207 = vst.msk [vmem:[#allocation2 + $0x4] sm:$0xf] %vm205_vm0, %v1723_v0  ;;  %v290_v6 = vshll.u32 %v285_v2, 16  ;;  %v269_v7 = vshrl.u32 %v267_v3, 16 }
  0x59   : > { %209 = vst.msk [vmem:[#allocation2 + $0xc] sm:$0xf] %vm205_vm0, %v1723_v0  ;;  %v212_v8 = vld [vmem:[%s177_s26] sm:$0x3]  ;;  %v272_v9 = vshll.u32 %v267_v3, 16  ;;  %v244_v12 = vrot.slane %v242_v4, 7 }
  0x5a   : > { %v214_v10 = vshll.u32 %v212_v8, 16  ;;  %v217_v11 = vshrl.u32 %v212_v8, 16  ;;  %v289_v13 = vrot.slane %v287_v5, 5  ;;  %v292_v14 = vrot.slane %v290_v6, 6  ;;  %s1724_s18 = smov 4   ;;  %v1572_v51 = vld [vmem:[#allocation6 + $0xc] sm:$0xff]  }
  0x5b   : > { %v271_v15 = vrot.slane %v269_v7, 6  ;;  %v274_v16 = vrot.slane %v272_v9, 7  ;;  %v248_v19 = vrot.slane %v244_v12, 4  ;;  %v1725_v25 = vmov 0.0   ;;  %v1571_v27 = vld [vmem:[#allocation6 + $0x8] ss:$0 sps:$4 sm:$0xff]  }
  0x5c   : > { %v216_v17 = vrot.slane %v214_v10, 5  ;;  %v219_v18 = vrot.slane %v217_v11, 4  ;;  %v293_v20 = vor.u32 %v292_v14, %v289_v13  ;;  %1502 = vmatprep.subr.bf16.mxu1 %v1725_v25  ;;  %vm344_vm2 = vcmask 1043456   ;;  %1358 = vmatprep.subr.bf16.mxu0 %v1725_v25  ;;  %v1575_v53 = vld [vmem:[#allocation6 + $0x14] ss:$0 sps:$4 sm:$0xff]   ;;  %v1573_v57 = vld [vmem:[#allocation6 + $0x18] sm:$0xff]  }
  0x5d   : > { %251 = vrot.lane.b32.xlu0 %v248_v19, %s1724_s18  ;;  %v275_v23 = vor.u32 %v274_v16, %v271_v15  ;;  %1504 = vmatpush3.bf16.msra.mxu1 %v1570_v21  ;;  %v245_v26 = vshll.u32 %v240_v1, 16  ;;  %vm1726_vm3 = vmmov 0   ;;  %v346_v29 = vsel %vm344_vm2, %v1571_v27, 0  ;;  %v264_v31 = vld [vmem:[#allocation2 + $0x8] sm:$0x1]  ;;  %v1578_v62 = vld [vmem:[#allocation6 + $0x30] sm:$0xff]  }
  0x5e   : > { %v294_v22 = vrot.slane %v293_v20, 4  ;;  %v220_v24 = vor.u32 %v219_v18, %v216_v17  ;;  %1503 = vmatprep.subr.bf16.mxu1 %v1725_v25  ;;  %1359 = vmatpush3.bf16.msra.mxu0 %v1570_v21  ;;  %vm261_vm4 = vcmask 155680   ;;  %vm262_vm5 = vsmask.f32 256  ;;  %v282_v36 = vld [vmem:[#allocation2 + $0x8] sm:$0xe] }
  0x5f   : > { %1366 = vmatprep.mubr.msk.bf16.mxu1 %vm1726_vm3, %v1725_v25  ;;  %1360 = vmatprep.subr.bf16.mxu0 %v1725_v25  ;;  %v247_v30 = vor.u32 %v245_v26, %v244_v12  ;;  %vm298_vm6 = vcmask 157728   ;;  %vm299_vm7 = vsmask.f32 2306  ;;  %vm263_vm8 = vmand %vm261_vm4, %vm262_vm5  ;;  %vm279_vm9 = vcmask 158753   ;;  %v231_v39 = vld [vmem:[#allocation2] sm:$0x8] }
  0x60   : > { %295 = vrot.lane.b32.xlu1 %v294_v22, %s1724_s18  ;;  %v221_v28 = vrot.slane %v220_v24, 4  ;;  %1362 = vmatprep.mubr.msk.bf16.mxu0 %vm1726_vm3, %v1725_v25  ;;  %vm280_vm10 = vsmask.f32 3334  ;;  %vm300_vm11 = vmand %vm298_vm6, %vm299_vm7  ;;  %v301_v33 = vld [vmem:[#allocation2 + $0xc] sm:$0x7]  ;;  %vm228_vm12 = vcmask 158755  }
  0x61   : > { %276 = vrot.lane.b32.xlu0 %v275_v23, %s1724_s18  ;;  %1505 = vmatpush3.bf16.msra.mxu1 %v346_v29  ;;  %vm229_vm13 = vsmask.f32 7950  ;;  %vm281_vm14 = vmand %vm279_vm9, %vm280_vm10  ;;  %vm234_vm15 = vcmask 156704   ;;  %vm235_vm0 = vsmask.f32 1280  ;;  %vm255_vm4 = vcmask 158754  }
  0x62   : > { %1374 = vmatprep.subr.bf16.mxu1 %v1725_v25  ;;  %1361 = vmatpush3.bf16.msra.mxu0 %v346_v29  ;;  %vm230_vm1 = vmand %vm228_vm12, %vm229_vm13  ;;  %vm256_vm5 = vsmask.f32 7946  ;;  %v237_v42 = vld [vmem:[#allocation2 + $0x4] sm:$0x3]  ;;  %v258_v44 = vld [vmem:[#allocation2 + $0x4] sm:$0xc] }
  0x63   : > { %1390 = vmatprep.subr.bf16.mxu0 %v1725_v25  ;;  %vm236_vm6 = vmand %vm234_vm15, %vm235_vm0  ;;  %v416_v55 = vsel %vm344_vm2, %v1575_v53, 0  ;;  %v1935_v59 = vld [vmem:[#allocation2 + $0x10] ss:$0 sps:$4 sm:$0x33]   ;;  %v1576_v60 = vld [vmem:[#allocation6 + $0x20] ss:$0 sps:$4 sm:$0xff]  }
  0x64   : > { %222 = vrot.lane.b32.xlu1 %v216_v17, %s1724_s18  ;;  %vm257_vm7 = vmand %vm255_vm4, %vm256_vm5  ;;  %v501_v61 = vsel %vm344_vm2, %v1576_v60, 0  ;;  %v1580_v63 = vld [vmem:[#allocation6 + $0x38] ss:$0 sps:$4 sm:$0xff]   ;;  %v1577_v0 = vld [vmem:[#allocation6 + $0x24] sm:$0xff]   ;;  %vm475_vm9 = vcmask 1046528   ;;  %vm736_vm10 = vcmask 1040384  }
  0x65   : > { %224 = vrot.lane.b32.xlu0 %v221_v28, %s1724_s18  ;;  %v1579_v1 = vld [vmem:[#allocation6 + $0x2c] ss:$0 sps:$4 sm:$0xff]   ;;  %v675_v2 = vsel %vm344_vm2, %v1580_v63, 0  ;;  %v1584_v5 = vld [vmem:[#allocation6 + $0x50] ss:$0 sps:$4 sm:$0xff]   ;;  %v1581_v6 = vld [vmem:[#allocation6 + $0x3c] sm:$0xff]  }
  0x66   : > { %v586_v3 = vsel %vm344_vm2, %v1579_v1, 0  ;;  %v1582_v4 = vld [vmem:[#allocation6 + $0x48] sm:$0xff]   ;;  %v1583_v7 = vld [vmem:[#allocation6 + $0x44] ss:$0 sps:$4 sm:$0xff]   ;;  %v837_v8 = vsel %vm344_vm2, %v1584_v5, 0  ;;  %v1585_v12 = vld [vmem:[#allocation6 + $0x54] sm:$0xff]  }
  0x67   : > { %v764_v9 = vsel %vm344_vm2, %v1583_v7, 0  ;;  %v1586_v10 = vld [vmem:[#allocation6 + $0x60] sm:$0xff]   ;;  %v1588_v11 = vld [vmem:[#allocation6 + $0x68] ss:$0 sps:$4 sm:$0xff]   ;;  %v1587_v13 = vld [vmem:[#allocation6 + $0x5c] ss:$0 sps:$4 sm:$0xff]  }
  0x68   : > { %249 = vrot.lane.b32.xlu1 %v247_v30, %s1724_s18  ;;  %v1014_v14 = vsel %vm344_vm2, %v1588_v11, 0  ;;  %v925_v15 = vsel %vm344_vm2, %v1587_v13, 0  ;;  %vm986_vm12 = vcmask 1042432   ;;  %s203_s9 = scalar_lea.vmem [#allocation8], %s1244_s7  ;;  %s1312_s4 = sshll.u32 %s1770_s16, 7 }
  0x69   : > { %s1153_s25 = sshll.u32 %s203_s9, 4  ;;  %s2086_s27 = scalar_lea.hbm %s2136_s3, %s1312_s4  ;;  %s2088_s25 = int_to_ptr.vmem [resolvable:$true] %s1153_s25 }
  0x6a   : > { %s1140_s28 = scalar_lea.sflag [#allocation5], %s1894_s6  ;;  %s1647_s23 = scalar_lea.vmem %s2088_s25, 128 }
  0x6b   : > { %p1648_p4 = scmp.ne.s32.totalorder %s2088_s25, %s1647_s23  ;;  %s1727_s16 = smov [#allocation8]  }
  0x6c   : > { %s1651_s29 = sshll.u32 %s1727_s16, 4  ;;  %s1652_s29 = int_to_ptr.vmem [resolvable:$false] %s1651_s29 }
  0x6d   : > { %p1649_p6 = pnand %p1648_p4, %p1843_p12  ;;  %s1653_s30 = scalar_lea.vmem %s1652_s29, 256 }
  0x6e   : > { %p1654_p10 = scmp.lt.s32.totalorder %s2088_s25, %s1652_s29  ;;  %p1655_p13 = scmp.lt.s32.totalorder %s1653_s30, %s1647_s23 }
  0x6f   : > { %p1650_p8 = pneg %p1649_p6 }
  0x70   : > { %p1656_p3 = por %p1655_p13, %p1654_p10 }
  0x72   : > { %p1657_p7 = pnand %p1656_p3, %p1650_p8 }
  0xcf   : > { %v252_v32 = vpop.permute.xlu0 %251 }
  0xd0   : > { %v265_v34 = vsel %vm263_vm8, %v252_v32, %v264_v31  ;;  %vm334_vm8 = vcmask 195584  }
  0xd1   : > { %266 = vst [vmem:[#allocation2 + $0x8] sm:$0x1] %v265_v34 }
  0xd2   : > { %v296_v35 = vpop.permute.xlu1 %295 }
  0xd3   : > { %v302_v37 = vsel %vm300_vm11, %v296_v35, %v301_v33  ;;  %v277_v38 = vpop.permute.xlu0 %276  ;;  %vm647_vm11 = vcmask 1041408  }
  0xd4   : > { %303 = vst [vmem:[#allocation2 + $0xc] sm:$0x7] %v302_v37  ;;  %v283_v40 = vsel %vm281_vm14, %v277_v38, %v282_v36  ;;  %vm1116_vm14 = vcmask 1046532  }
  0xd5   : > { %284 = vst [vmem:[#allocation2 + $0x8] sm:$0xe] %v283_v40  ;;  %vm1117_vm15 = vmor %vm986_vm12, %vm1116_vm14 }
  0xd6   : > { %v223_v41 = vpop.permute.xlu1 %222 }
  0xd7   : > { %v232_v43 = vsel %vm230_vm1, %v223_v41, %v231_v39  ;;  %v225_v45 = vpop.permute.xlu0 %224 }
  0xd8   : > { %233 = vst [vmem:[#allocation2] sm:$0x8] %v232_v43  ;;  %v238_v46 = vsel %vm236_vm6, %v225_v45, %v237_v42 }
  0xd9   : > { %239 = vst [vmem:[#allocation2 + $0x4] sm:$0x3] %v238_v46 }
  0xda   : > { %v250_v47 = vpop.permute.xlu1 %249 }
  0xdb   : > { %v307_v48 = vld [vmem:[#allocation2 + $0xc] sm:$0xf]  ;;  %v259_v49 = vsel %vm257_vm7, %v250_v47, %v258_v44 }
  0xdc   : > { %260 = vst [vmem:[#allocation2 + $0x4] sm:$0xc] %v259_v49  ;;  %v306_v50 = vld [vmem:[#allocation2 + $0x8] sm:$0xf] }
  0xdd   : > { %v1925_v52 = vcombine.low %v306_v50, %v307_v48 }
  0xdf   : > { %1367 = vmatmul.mubr.msk.bf16.vlgmr.msra.gmra.mrb[0].mxu1 %vm334_vm8, %v1925_v52  ;;  %v304_v54 = vld [vmem:[#allocation2] sm:$0xf] }
  0xe0   : > { %1375 = vmatpush3.bf16.msra.mxu1 %v1572_v51  ;;  %1370 = vmatprep.mubr.msk.bf16.mxu1 %vm1726_vm3, %v1725_v25 }
  0xe1   : > { %1376 = vmatprep.subr.bf16.mxu1 %v1725_v25 }
  0xe3   : > { %v305_v56 = vld [vmem:[#allocation2 + $0x4] sm:$0xf] }
  0xe4   : > { %v1933_v58 = vcombine.low %v304_v54, %v305_v56  ;;  %1377 = vmatpush3.bf16.msra.mxu1 %v416_v55 }
  0xe5   : > { %1406 = vmatprep.subr.bf16.mxu1 %v1725_v25 }
  0xe6   : > { %1363 = vmatmul.mubr.msk.bf16.vlgmr.msra.gmra.mrb[0].mxu0 %vm334_vm8, %v1933_v58 }
  0xe7   : > { %1391 = vmatpush3.bf16.msra.mxu0 %v1573_v57  ;;  %1394 = vmatprep.mubr.msk.bf16.mxu0 %vm1726_vm3, %v1725_v25 }
  0xe8   : > { %1371 = vmatmul.mubr.msk.bf16.gmra.mrb[4].mxu1 %vm334_vm8, %v1935_v59  ;;  %1392 = vmatprep.subr.bf16.mxu0 %v1725_v25 }
  0xe9   : > { %1378 = vmatprep.mubr.msk.bf16.mxu1 %vm1726_vm3, %v1725_v25 }
  0xeb   : > { %1393 = vmatpush3.bf16.msra.mxu0 %v501_v61 }
  0xec   : > { %1422 = vmatprep.subr.bf16.mxu0 %v1725_v25 }
  0xee   : > { %1395 = vmatmul.mubr.msk.bf16.vlgmr.msra.gmra.mrb[4].mxu0 %vm334_vm8, %v1933_v58 }
  0xef   : > { %1423 = vmatpush3.bf16.msra.mxu0 %v1578_v62  ;;  %1398 = vmatprep.mubr.msk.bf16.mxu0 %vm1726_vm3, %v1725_v25 }
  0xf0   : > { %1379 = vmatmul.mubr.msk.bf16.vlgmr.msra.gmra.mrb[8].mxu1 %vm334_vm8, %v1933_v58  ;;  %1424 = vmatprep.subr.bf16.mxu0 %v1725_v25 }
  0xf1   : > { %1407 = vmatpush3.bf16.msra.mxu1 %v1577_v0  ;;  %1382 = vmatprep.mubr.msk.bf16.mxu1 %vm1726_vm3, %v1725_v25 }
  0xf2   : > { %1408 = vmatprep.subr.bf16.mxu1 %v1725_v25 }
  0xf3   : > { %1425 = vmatpush3.bf16.msra.mxu0 %v675_v2 }
  0xf4   : > { %1454 = vmatprep.subr.bf16.mxu0 %v1725_v25 }
  0xf5   : > { %1409 = vmatpush3.bf16.msra.mxu1 %v586_v3 }
  0xf6   : > { %1399 = vmatmul.mubr.msk.bf16.gmra.mrb[8].mxu0 %vm334_vm8, %v1925_v52  ;;  %1438 = vmatprep.subr.bf16.mxu1 %v1725_v25 }
  0xf7   : > { %1402 = vmatprep.mubr.msk.bf16.mxu0 %vm1726_vm3, %v1725_v25 }
  0xf8   : > { %1383 = vmatmul.mubr.msk.bf16.gmra.mrb[12].mxu1 %vm334_vm8, %v1925_v52 }
  0xf9   : > { %1386 = vmatprep.mubr.msk.bf16.mxu1 %vm1726_vm3, %v1725_v25 }
  0xfe   : > { %1403 = vmatmul.mubr.msk.bf16.gmra.mrb[12].mxu0 %vm334_vm8, %v1935_v59 }
  0xff   : > { %1426 = vmatprep.mubr.msk.bf16.mxu0 %vm1726_vm3, %v1725_v25 }
 0x100   : > { %1387 = vmatmul.mubr.msk.bf16.gmra.mrb[16].mxu1 %vm334_vm8, %v1935_v59 }
 0x101   : > { %1410 = vmatprep.mubr.msk.bf16.mxu1 %vm1726_vm3, %v1725_v25 }
 0x106   : > { %1427 = vmatmul.mubr.msk.bf16.vlgmr.msra.gmra.mrb[16].mxu0 %vm334_vm8, %v1933_v58 }
 0x107   : > { %1455 = vmatpush3.bf16.msra.mxu0 %v1582_v4  ;;  %1430 = vmatprep.mubr.msk.bf16.mxu0 %vm1726_vm3, %v1725_v25 }
 0x108   : > { %1411 = vmatmul.mubr.msk.bf16.vlgmr.msra.gmra.mrb[20].mxu1 %vm334_vm8, %v1933_v58  ;;  %1456 = vmatprep.subr.bf16.mxu0 %v1725_v25 }
 0x109   : > { %1439 = vmatpush3.bf16.msra.mxu1 %v1581_v6  ;;  %1414 = vmatprep.mubr.msk.bf16.mxu1 %vm1726_vm3, %v1725_v25 }
 0x10a   : > { %1440 = vmatprep.subr.bf16.mxu1 %v1725_v25 }
 0x10b   : > { %1457 = vmatpush3.bf16.msra.mxu0 %v837_v8 }
 0x10c   : > { %1486 = vmatprep.subr.bf16.mxu0 %v1725_v25 }
 0x10d   : > { %1441 = vmatpush3.bf16.msra.mxu1 %v764_v9 }
 0x10e   : > { %1431 = vmatmul.mubr.msk.bf16.gmra.mrb[20].mxu0 %vm334_vm8, %v1925_v52  ;;  %1470 = vmatprep.subr.bf16.mxu1 %v1725_v25 }
 0x10f   : > { %1434 = vmatprep.mubr.msk.bf16.mxu0 %vm1726_vm3, %v1725_v25 }
 0x110   : > { %1415 = vmatmul.mubr.msk.bf16.gmra.mrb[24].mxu1 %vm334_vm8, %v1925_v52 }
 0x111   : > { %1418 = vmatprep.mubr.msk.bf16.mxu1 %vm1726_vm3, %v1725_v25 }
 0x116   : > { %1435 = vmatmul.mubr.msk.bf16.gmra.mrb[24].mxu0 %vm334_vm8, %v1935_v59 }
 0x117   : > { %1458 = vmatprep.mubr.msk.bf16.mxu0 %vm1726_vm3, %v1725_v25 }
 0x118   : > { %1419 = vmatmul.mubr.msk.bf16.gmra.mrb[28].mxu1 %vm334_vm8, %v1935_v59 }
 0x119   : > { %1442 = vmatprep.mubr.msk.bf16.mxu1 %vm1726_vm3, %v1725_v25 }
 0x11e   : > { %1459 = vmatmul.mubr.msk.bf16.vlgmr.msra.gmra.mrb[28].mxu0 %vm334_vm8, %v1933_v58 }
 0x11f   : > { %1487 = vmatpush3.bf16.msra.mxu0 %v1586_v10  ;;  %1462 = vmatprep.mubr.msk.bf16.mxu0 %vm1726_vm3, %v1725_v25 }
 0x120   : > { %1443 = vmatmul.mubr.msk.bf16.vlgmr.msra.gmra.mrb[32].mxu1 %vm334_vm8, %v1933_v58  ;;  %1488 = vmatprep.subr.bf16.mxu0 %v1725_v25 }
 0x121   : > { %1471 = vmatpush3.bf16.msra.mxu1 %v1585_v12  ;;  %1446 = vmatprep.mubr.msk.bf16.mxu1 %vm1726_vm3, %v1725_v25 }
 0x122   : > { %1472 = vmatprep.subr.bf16.mxu1 %v1725_v25 }
 0x123   : > { %1489 = vmatpush3.bf16.msra.mxu0 %v1014_v14 }
 0x125   : > { %1473 = vmatpush3.bf16.msra.mxu1 %v925_v15 }
 0x126   : > { %1463 = vmatmul.mubr.msk.bf16.gmra.mrb[32].mxu0 %vm334_vm8, %v1925_v52 }
 0x127   : > { %1466 = vmatprep.mubr.msk.bf16.mxu0 %vm1726_vm3, %v1725_v25 }
 0x128   : > { %1447 = vmatmul.mubr.msk.bf16.gmra.mrb[36].mxu1 %vm334_vm8, %v1925_v52 }
 0x129   : > { %1450 = vmatprep.mubr.msk.bf16.mxu1 %vm1726_vm3, %v1725_v25 }
 0x12e   : > { %1467 = vmatmul.mubr.msk.bf16.gmra.mrb[36].mxu0 %vm334_vm8, %v1935_v59 }
 0x12f   : > { %1490 = vmatprep.mubr.msk.bf16.mxu0 %vm1726_vm3, %v1725_v25 }
 0x130   : > { %1451 = vmatmul.mubr.msk.bf16.gmra.mrb[40].mxu1 %vm334_vm8, %v1935_v59 }
 0x131   : > { %1474 = vmatprep.mubr.msk.bf16.mxu1 %vm1726_vm3, %v1725_v25 }
 0x136   : > { %1491 = vmatmul.mubr.msk.bf16.vlgmr.msra.gmra.mrb[40].mxu0 %vm334_vm8, %v1933_v58 }
 0x137   : > { %1494 = vmatprep.mubr.msk.bf16.mxu0 %vm1726_vm3, %v1725_v25 }
 0x138   : > { %1475 = vmatmul.mubr.msk.bf16.vlgmr.msra.gmra.mrb[44].mxu1 %vm334_vm8, %v1933_v58 }
 0x139   : > { %1478 = vmatprep.mubr.msk.bf16.mxu1 %vm1726_vm3, %v1725_v25 }
 0x13e   : > { %1495 = vmatmul.mubr.msk.bf16.gmra.mrb[44].mxu0 %vm334_vm8, %v1925_v52 }
 0x13f   : > { %1498 = vmatprep.mubr.msk.bf16.mxu0 %vm1726_vm3, %v1725_v25 }
 0x140   : > { %1479 = vmatmul.mubr.msk.bf16.gmra.mrb[48].mxu1 %vm334_vm8, %v1925_v52 }
 0x141   : > { %1482 = vmatprep.mubr.msk.bf16.mxu1 %vm1726_vm3, %v1725_v25  ;;  %vm560_vm3 = vcmask 1045504  }
 0x146   : > { %1499 = vmatmul.mubr.msk.bf16.gmra.mrb[48].mxu0 %vm334_vm8, %v1935_v59 }
 0x148   : > { %1483 = vmatmul.mubr.msk.bf16.gmra.mrb[52].mxu1 %vm334_vm8, %v1935_v59 }
 0x1b2   : > { %v390_v16 = vpop.f32.mrb[0].mxu1 }
 0x1b3   : > { %v1368_v17 = vpop.f32.mrb[1].mxu1 }
 0x1b4   : > { %v393_v18 = vpop.f32.mrb[2].mxu1 }
 0x1b5   : > { %v1369_v19 = vpop.f32.mrb[3].mxu1 }
 0x1b9   : > { %v382_v20 = vpop.f32.mrb[0].mxu0 }
 0x1ba   : > { %v1364_v21 = vpop.f32.mrb[1].mxu0 }
 0x1bb   : > { %v385_v22 = vpop.f32.mrb[2].mxu0  ;;  %v397_v23 = vpop.f32.mrb[4].mxu1 }
 0x1bc   : > { %v1365_v24 = vpop.f32.mrb[3].mxu0  ;;  %v1372_v26 = vpop.f32.mrb[5].mxu1 }
 0x1bd   : > { %v399_v27 = vpop.f32.mrb[6].mxu1 }
 0x1be   : > { %v1373_v28 = vpop.f32.mrb[7].mxu1 }
 0x1c1   : > { %v537_v29 = vpop.f32.mrb[4].mxu0 }
 0x1c2   : > { %v1396_v25 = vpop.f32.mrb[5].mxu0  ;;  %v561_v32 = vrot.slane %v537_v29, 2 }
 0x1c3   : > { %v452_v30 = vpop.f32.mrb[8].mxu1  ;;  %v540_v31 = vpop.f32.mrb[6].mxu0 }
 0x1c4   : > { %v562_v33 = vrot.slane %v540_v31, 2  ;;  %v1380_v34 = vpop.f32.mrb[9].mxu1  ;;  %v1397_v35 = vpop.f32.mrb[7].mxu0  ;;  %v476_v37 = vrot.slane %v452_v30, 1 }
 0x1c5   : > { %v455_v36 = vpop.f32.mrb[10].mxu1 }
 0x1c6   : > { %v563_v38 = vsel %vm560_vm3, %v561_v32, %v562_v33  ;;  %v477_v39 = vrot.slane %v455_v36, 1  ;;  %v1381_v40 = vpop.f32.mrb[11].mxu1 }
 0x1c8   : > { %v478_v41 = vsel %vm475_vm9, %v476_v37, %v477_v39 }
 0x1c9   : > { %v484_v42 = vadd.f32 %v478_v41, %v382_v20  ;;  %v545_v43 = vpop.f32.mrb[8].mxu0 }
 0x1ca   : > { %v564_v44 = vrot.slane %v545_v43, 2  ;;  %v1400_v45 = vpop.f32.mrb[9].mxu0 }
 0x1cb   : > { %v460_v46 = vpop.f32.mrb[12].mxu1  ;;  %v548_v47 = vpop.f32.mrb[10].mxu0  ;;  %v569_v48 = vadd.f32 %v563_v38, %v484_v42 }
 0x1cc   : > { %v565_v49 = vsel %vm560_vm3, %v562_v33, %v564_v44  ;;  %v479_v50 = vrot.slane %v460_v46, 1  ;;  %v1384_v51 = vpop.f32.mrb[13].mxu1  ;;  %v1401_v52 = vpop.f32.mrb[11].mxu0 }
 0x1cd   : > { %v463_v53 = vpop.f32.mrb[14].mxu1 }
 0x1ce   : > { %v480_v54 = vsel %vm475_vm9, %v477_v39, %v479_v50  ;;  %v486_v55 = vadd.f32 %v479_v50, %v390_v16  ;;  %v1385_v56 = vpop.f32.mrb[15].mxu1 }
 0x1cf   : > { %v485_v57 = vadd.f32 %v480_v54, %v385_v22 }
 0x1d0   : > { %v571_v58 = vadd.f32 %v564_v44, %v486_v55 }
 0x1d1   : > { %v552_v59 = vpop.f32.mrb[12].mxu0  ;;  %v570_v60 = vadd.f32 %v565_v49, %v485_v57 }
 0x1d2   : > { %v1404_v61 = vpop.f32.mrb[13].mxu0 }
 0x1d3   : > { %v467_v62 = vpop.f32.mrb[16].mxu1  ;;  %v554_v63 = vpop.f32.mrb[14].mxu0 }
 0x1d4   : > { %v1388_v0 = vpop.f32.mrb[17].mxu1  ;;  %v1405_v1 = vpop.f32.mrb[15].mxu0 }
 0x1d5   : > { %v469_v2 = vpop.f32.mrb[18].mxu1 }
 0x1d6   : > { %v1389_v3 = vpop.f32.mrb[19].mxu1 }
 0x1d9   : > { %v711_v4 = vpop.f32.mrb[16].mxu0 }
 0x1da   : > { %v1428_v5 = vpop.f32.mrb[17].mxu0  ;;  %v737_v8 = vrot.slane %v711_v4, 7 }
 0x1db   : > { %v622_v6 = vpop.f32.mrb[20].mxu1  ;;  %v714_v7 = vpop.f32.mrb[18].mxu0 }
 0x1dc   : > { %v738_v9 = vrot.slane %v714_v7, 7  ;;  %v1412_v10 = vpop.f32.mrb[21].mxu1  ;;  %v1429_v11 = vpop.f32.mrb[19].mxu0  ;;  %v648_v13 = vrot.slane %v622_v6, 6 }
 0x1dd   : > { %v625_v12 = vpop.f32.mrb[22].mxu1 }
 0x1de   : > { %v649_v14 = vrot.slane %v625_v12, 6  ;;  %v1413_v15 = vpop.f32.mrb[23].mxu1  ;;  %v739_v16 = vsel %vm736_vm10, %v737_v8, %v738_v9 }
 0x1e0   : > { %v650_v17 = vsel %vm647_vm11, %v648_v13, %v649_v14 }
 0x1e1   : > { %v719_v18 = vpop.f32.mrb[20].mxu0  ;;  %v658_v19 = vadd.f32 %v650_v17, %v569_v48 }
 0x1e2   : > { %v740_v20 = vrot.slane %v719_v18, 7  ;;  %v1432_v21 = vpop.f32.mrb[21].mxu0 }
 0x1e3   : > { %v630_v22 = vpop.f32.mrb[24].mxu1  ;;  %v722_v23 = vpop.f32.mrb[22].mxu0  ;;  %v747_v24 = vadd.f32 %v739_v16, %v658_v19 }
 0x1e4   : > { %v651_v26 = vrot.slane %v630_v22, 6  ;;  %v742_v27 = vrot.slane %v722_v23, 7  ;;  %v1416_v28 = vpop.f32.mrb[25].mxu1  ;;  %v1433_v29 = vpop.f32.mrb[23].mxu0  ;;  %v741_v25 = vsel %vm736_vm10, %v738_v9, %v740_v20 }
 0x1e5   : > { %v633_v30 = vpop.f32.mrb[26].mxu1 }
 0x1e6   : > { %v652_v31 = vsel %vm647_vm11, %v649_v14, %v651_v26  ;;  %v653_v32 = vrot.slane %v633_v30, 6  ;;  %v1417_v33 = vpop.f32.mrb[27].mxu1  ;;  %v743_v34 = vsel %vm736_vm10, %v740_v20, %v742_v27 }
 0x1e7   : > { %v659_v35 = vadd.f32 %v652_v31, %v570_v60 }
 0x1e8   : > { %v654_v36 = vsel %vm647_vm11, %v651_v26, %v653_v32 }
 0x1e9   : > { %v727_v37 = vpop.f32.mrb[24].mxu0  ;;  %v748_v38 = vadd.f32 %v741_v25, %v659_v35  ;;  %v660_v39 = vadd.f32 %v654_v36, %v571_v58 }
 0x1ea   : > { %v1436_v40 = vpop.f32.mrb[25].mxu0 }
 0x1eb   : > { %v638_v41 = vpop.f32.mrb[28].mxu1  ;;  %v729_v42 = vpop.f32.mrb[26].mxu0  ;;  %v749_v43 = vadd.f32 %v743_v34, %v660_v39 }
 0x1ec   : > { %v1420_v44 = vpop.f32.mrb[29].mxu1  ;;  %v1437_v45 = vpop.f32.mrb[27].mxu0 }
 0x1ed   : > { %v640_v46 = vpop.f32.mrb[30].mxu1 }
 0x1ee   : > { %v1421_v47 = vpop.f32.mrb[31].mxu1 }
 0x1ef   : > { %v1295_v47 = vld [vmem:[%s2135_s2] ss:$0 sm:$0xff] }
 0x1f1   : > { %v873_v48 = vpop.f32.mrb[28].mxu0 }
 0x1f2   : > { %v1460_v49 = vpop.f32.mrb[29].mxu0 }
 0x1f3   : > { %v800_v50 = vpop.f32.mrb[32].mxu1  ;;  %v875_v51 = vpop.f32.mrb[30].mxu0 }
 0x1f4   : > { %v1444_v52 = vpop.f32.mrb[33].mxu1  ;;  %v1461_v53 = vpop.f32.mrb[31].mxu0  ;;  %v898_v59 = vrot.slane %v875_v51, 4 }
 0x1f5   : > { %v802_v54 = vpop.f32.mrb[34].mxu1 }
 0x1f6   : > { %v820_v55 = vadd.f32 %v802_v54, %v747_v24  ;;  %v1445_v56 = vpop.f32.mrb[35].mxu1 }
 0x1f9   : > { %v880_v57 = vpop.f32.mrb[32].mxu0 }
 0x1fa   : > { %v899_v58 = vrot.slane %v880_v57, 4  ;;  %v1464_v60 = vpop.f32.mrb[33].mxu0 }
 0x1fb   : > { %v807_v61 = vpop.f32.mrb[36].mxu1  ;;  %v883_v62 = vpop.f32.mrb[34].mxu0 }
 0x1fc   : > { %v900_v63 = vsel %vm344_vm2, %v898_v59, %v899_v58  ;;  %v821_v0 = vadd.f32 %v807_v61, %v748_v38  ;;  %v901_v1 = vrot.slane %v883_v62, 4  ;;  %v1448_v2 = vpop.f32.mrb[37].mxu1  ;;  %v1465_v3 = vpop.f32.mrb[35].mxu0 }
 0x1fd   : > { %v908_v4 = vadd.f32 %v900_v63, %v820_v55  ;;  %v810_v5 = vpop.f32.mrb[38].mxu1 }
 0x1fe   : > { %v902_v6 = vsel %vm344_vm2, %v899_v58, %v901_v1  ;;  %v822_v7 = vadd.f32 %v810_v5, %v749_v43  ;;  %v1449_v8 = vpop.f32.mrb[39].mxu1 }
 0x1ff   : > { %v909_v9 = vadd.f32 %v902_v6, %v821_v0 }
 0x201   : > { %v888_v10 = vpop.f32.mrb[36].mxu0 }
 0x202   : > { %v903_v11 = vrot.slane %v888_v10, 4  ;;  %v1468_v12 = vpop.f32.mrb[37].mxu0 }
 0x203   : > { %v815_v13 = vpop.f32.mrb[40].mxu1  ;;  %v891_v14 = vpop.f32.mrb[38].mxu0 }
 0x204   : > { %v904_v15 = vsel %vm344_vm2, %v901_v1, %v903_v11  ;;  %v1452_v16 = vpop.f32.mrb[41].mxu1  ;;  %v1469_v17 = vpop.f32.mrb[39].mxu0 }
 0x205   : > { %v910_v18 = vadd.f32 %v904_v15, %v822_v7  ;;  %v817_v19 = vpop.f32.mrb[42].mxu1 }
 0x206   : > { %v1453_v20 = vpop.f32.mrb[43].mxu1 }
 0x209   : > { %v1050_v21 = vpop.f32.mrb[40].mxu0 }
 0x20a   : > { %v1492_v22 = vpop.f32.mrb[41].mxu0 }
 0x20b   : > { %v961_v23 = vpop.f32.mrb[44].mxu1  ;;  %v1052_v24 = vpop.f32.mrb[42].mxu0 }
 0x20c   : > { %v1476_v26 = vpop.f32.mrb[45].mxu1  ;;  %v1493_v27 = vpop.f32.mrb[43].mxu0  ;;  %v1075_v30 = vrot.slane %v1052_v24, 6 }
 0x20d   : > { %v963_v28 = vpop.f32.mrb[46].mxu1 }
 0x20e   : > { %v1477_v29 = vpop.f32.mrb[47].mxu1  ;;  %v987_v35 = vrot.slane %v963_v28, 5 }
 0x211   : > { %v1057_v25 = vpop.f32.mrb[44].mxu0 }
 0x212   : > { %v1076_v31 = vrot.slane %v1057_v25, 6  ;;  %v1496_v32 = vpop.f32.mrb[45].mxu0 }
 0x213   : > { %v968_v33 = vpop.f32.mrb[48].mxu1  ;;  %v1060_v34 = vpop.f32.mrb[46].mxu0 }
 0x214   : > { %v1077_v36 = vsel %vm647_vm11, %v1075_v30, %v1076_v31  ;;  %v988_v37 = vrot.slane %v968_v33, 5  ;;  %v1078_v38 = vrot.slane %v1060_v34, 6  ;;  %v1480_v39 = vpop.f32.mrb[49].mxu1  ;;  %v1497_v40 = vpop.f32.mrb[47].mxu0 }
 0x215   : > { %v971_v41 = vpop.f32.mrb[50].mxu1 }
 0x216   : > { %v989_v42 = vsel %vm986_vm12, %v987_v35, %v988_v37  ;;  %v1079_v43 = vsel %vm647_vm11, %v1076_v31, %v1078_v38  ;;  %v990_v44 = vrot.slane %v971_v41, 5  ;;  %v1481_v45 = vpop.f32.mrb[51].mxu1 }
 0x217   : > { %v997_v46 = vadd.f32 %v989_v42, %v908_v4 }
 0x218   : > { %v991_v48 = vsel %vm986_vm12, %v988_v37, %v990_v44 }
 0x219   : > { %v1085_v49 = vadd.f32 %v1077_v36, %v997_v46  ;;  %v998_v50 = vadd.f32 %v991_v48, %v909_v9  ;;  %v1065_v51 = vpop.f32.mrb[48].mxu0 }
 0x21a   : > { %v1080_v52 = vrot.slane %v1065_v51, 6  ;;  %v1500_v53 = vpop.f32.mrb[49].mxu0 }
 0x21b   : > { %v1095_v54 = vadd.f32 %v1295_v47, %v1085_v49  ;;  %v1086_v55 = vadd.f32 %v1079_v43, %v998_v50  ;;  %v976_v56 = vpop.f32.mrb[52].mxu1  ;;  %v1068_v57 = vpop.f32.mrb[50].mxu0 }
 0x21c   : > { %v1081_v59 = vsel %vm647_vm11, %v1078_v38, %v1080_v52  ;;  %v992_v58 = vrot.slane %v976_v56, 5  ;;  %v1484_v60 = vpop.f32.mrb[53].mxu1  ;;  %v1501_v61 = vpop.f32.mrb[51].mxu0 }
 0x21d   : > { %vm1098_vm2 = vcmp.gt.f32.partialorder %v1095_v54, 0.0  ;;  %v1101_v62 = vmul.f32 0.01, %v1095_v54  ;;  %v1096_v63 = vadd.f32 %v1295_v47, %v1086_v55  ;;  %v979_v0 = vpop.f32.mrb[54].mxu1 }
 0x21e   : > { %v993_v1 = vsel %vm986_vm12, %v990_v44, %v992_v58  ;;  %v1485_v2 = vpop.f32.mrb[55].mxu1 }
 0x21f   : > { %v1104_v3 = vsel %vm1098_vm2, %v1095_v54, %v1101_v62  ;;  %vm1099_vm13 = vcmp.gt.f32.partialorder %v1096_v63, 0.0  ;;  %v1102_v4 = vmul.f32 0.01, %v1096_v63  ;;  %v999_v5 = vadd.f32 %v993_v1, %v910_v18 }
 0x220   : > { %v1107_v6 = vpack.c.bf16 %v1104_v3, %v1104_v3 }
 0x221   : > { %v1105_v7 = vsel %vm1099_vm13, %v1096_v63, %v1102_v4  ;;  %v1087_v8 = vadd.f32 %v1081_v59, %v999_v5 }
 0x222   : > { %1108 = vst [vmem:[%s203_s9] sm:$0x3] %v1107_v6  ;;  %v1309_v9 = vpack.c.bf16 %v1105_v7, %v1105_v7  ;;  %v1298_v11 = vrot.slane %v1107_v6, 9 }
 0x223   : > { %v1097_v10 = vadd.f32 %v1295_v47, %v1087_v8 }
 0x224   : > { %v1120_v12 = vrot.slane %v1309_v9, 5  ;;  %v1300_v13 = vrot.slane %v1309_v9, 10 }
 0x225   : > { %vm1100_vm0 = vcmp.gt.f32.partialorder %v1097_v10, 0.0  ;;  %v1103_v14 = vmul.f32 0.01, %v1097_v10 }
 0x226   : > { %v1121_v15 = vsel %vm1117_vm15, %v1298_v11, %v1120_v12  ;;  %1131 = vst [vmem:[%s203_s9 + $0x4] sm:$0x3] %v1300_v13 }
 0x227   : > { %1123 = vst [vmem:[%s203_s9] sm:$0xc] %v1121_v15  ;;  %v1106_v16 = vsel %vm1100_vm0, %v1097_v10, %v1103_v14 }
 0x228   : > { %v1311_v17 = vpack.c.bf16 %v1106_v16, %v1106_v16 }
 0x22a   : > { %v1136_v18 = vrot.slane %v1311_v17, 7 }
 0x22c   : > { %1138 = vst [vmem:[%s203_s9 + $0x4] sm:$0xc] %v1136_v18 }
 0x22d   : > { %1660 = shalt.err (!%p1657_p7)
}
 0x22e   : > { %s1661_s22 = scalar_lea.hbm %s2086_s27, 128  ;;  %s1665_s26 = scalar_lea.hbm %s2136_s3, 256 }
 0x22f   : > { %p1662_p9 = scmp.ne.s32.totalorder %s2086_s27, %s1661_s22  ;;  %p1666_p5 = scmp.lt.u32.totalorder %s2086_s27, %s2136_s3 }
 0x230   : > { %p1667_p11 = scmp.lt.u32.totalorder %s1665_s26, %s1661_s22  ;;  %p1669_p4 = scmp.lt.u32.totalorder %s1661_s22, %s2086_s27 }
 0x231   : > { %p1663_p1 = pnand %p1662_p9, %p1843_p12 }
 0x232   : > { %p1668_p2 = por %p1667_p11, %p1666_p5 }
 0x233   : > { %p1664_p0 = pneg %p1663_p1 }
 0x234   : > { %p1670_p6 = por %p1669_p4, %p1668_p2 }
 0x236   : > { %p1671_p8 = pnand %p1670_p6, %p1664_p0 }
 0x238   : > { %1674 = shalt.err (!%p1671_p8)
}
 0x239   : > { %s1728_s9 = smov 64  }
 0x23a   : > { %1512 = dma.vmem_to_hbm [thread:$0]  (%p1843_p12), %s2088_s25, 128, %s2086_s27, %s1140_s28, %s1728_s9, %s1728_s9, %s1724_s18  }
 0x23b PF: > { %s1168_s4 = sand.u32 1, %s1705_s12   ;;  %p2151_p10 = scmp.ne.s32.totalorder %s2141_s19, 0 }
 0x23c   : > { %p2152_p13 = scmp.ge.s32.totalorder %s1717_s15, 2  ;;  %s1169_s5 = scalar_lea.sflag [#allocation5], %s1168_s4 }
 0x23e   : > { %p1523_p3 = pnand %p2152_p13, %p2151_p10 }
 0x240   : > { %1700 = dma.done.wait (!%p1523_p3), %s1169_s5, 128  }
 0x241   : > { %1702 = vsyncadd (!%p1523_p3), %s1169_s5, 4294967168  ;;  %p17_p7 = scmp.ge.s32.totalorder %s1805_s24, 4   ;;  %s2153_s12 = smov %s1709_s13 }
 0x242   : > { %s2154_s13 = smov %s1713_s14  ;;  %s2155_s14 = smov %s1839_s17 }
 0x243   : > { %s2156_s15 = smov %s1805_s24  ;;  %19 = sbr.rel (!%p17_p7) target bundleno = 6 (0x6), region = 89 }
 0x24a   :  { %1174 = vsyncpa [#allocation4], 1 }
 0x24b   :  { %1176 = vsyncpa [#allocation4 + $0x1], 1 }
 0x24c   :  { %1177 = vsyncpa [#allocation7], 1 }
 0x24d   :  { %1178 = vsyncpa [#allocation5], 1 }
 0x24e   :  { %1180 = vsyncpa [#allocation5 + $0x1], 1 }

</bundles_post_ra>
